<compile_context>
chip_gen: v6e
topology: v6e:2x2x1
jax: 0.10.0
libtpu: 0.0.40
codegen_flags: <defaults>
</compile_context>

<pallas_src>
import jax
import jax.numpy as jnp
from jax.experimental import pallas as pl
from jax.experimental.pallas import tpu as pltpu

BATCH_SIZE = 10
INPUT_SHAPE = 16          # -> in_features = 256
HIDDEN = 50
OUT = 1
LANES = 128               # vreg lane width
SUBLANES = 8              # f32 sublane tile


def _mlp_kernel(x_ref, w1_ref, b1_ref, w2r_ref, b2_ref, o_ref):
    # x:  (TB, F) bf16     w1: (F, H) bf16    b1: (1, H) f32
    # w2r:(1, H)  f32      b2: (1, 1) f32     o:  (TB, 128) f32
    # fc1 on the MXU: bf16 operands, f32 accumulation.
    h = jnp.dot(x_ref[...], w1_ref[...], preferred_element_type=jnp.float32)
    h = jnp.maximum(h + b1_ref[...], 0.0)                       # bias + ReLU (VPU, f32)
    # fc2 (K=50, N=1): elementwise mul + cross-lane reduce (VPU/XLU), not the MXU.
    z = jnp.sum(h * w2r_ref[...], axis=-1, keepdims=True) + b2_ref[...]
    y = jax.nn.sigmoid(z)                                       # f32 (EUP)
    # Lane-dense store: broadcast the (TB, 1) result across a full 128-lane slab.
    o_ref[...] = jnp.broadcast_to(y, o_ref.shape).astype(o_ref.dtype)


def net_forward(x, w1, b1, w2, b2):
    """x: (batch, input_shape, input_shape) or (batch, F). Returns (batch, 1) f32."""
    B = x.shape[0]
    x2d = x.reshape(B, -1)                                      # x.view(batch_size, -1)
    F_in = x2d.shape[1]

    # Batch tiling: 128 rows/step when batching up; otherwise one sublane-padded tile.
    tb = 128 if B >= 128 else max(SUBLANES, ((B + SUBLANES - 1) // SUBLANES) * SUBLANES)
    Bp = ((B + tb - 1) // tb) * tb
    if Bp != B:
        x2d = jnp.pad(x2d, ((0, Bp - B), (0, 0)))

    # bf16 operands for the MXU matmul; everything else stays f32.
    x_bf = x2d.astype(jnp.bfloat16)
    w1_bf = w1.astype(jnp.bfloat16)
    b1_2d = b1.reshape(1, HIDDEN).astype(jnp.float32)
    w2_row = w2.reshape(1, HIDDEN).astype(jnp.float32)          # fc2 weight as a lane row
    b2_2d = b2.reshape(1, OUT).astype(jnp.float32)

    grid = (pl.cdiv(Bp, tb),)
    out = pl.pallas_call(
        _mlp_kernel,
        out_shape=jax.ShapeDtypeStruct((Bp, LANES), jnp.float32),
        grid=grid,
        in_specs=[
            pl.BlockSpec((tb, F_in), lambda i: (i, 0)),         # x rows stream per step
            pl.BlockSpec((F_in, HIDDEN), lambda i: (0, 0)),     # weights stay resident
            pl.BlockSpec((1, HIDDEN), lambda i: (0, 0)),
            pl.BlockSpec((1, HIDDEN), lambda i: (0, 0)),
            pl.BlockSpec((1, OUT), lambda i: (0, 0)),
        ],
        out_specs=pl.BlockSpec((tb, LANES), lambda i: (i, 0)),
        compiler_params=pltpu.CompilerParams(
            dimension_semantics=("parallel",)),                 # megacore split on v7x
    )(x_bf, w1_bf, b1_2d, w2_row, b2_2d)

    return out[:B, :OUT]


def init_params(key):
    """Deterministic init mirroring nn.Linear's U(-1/sqrt(fan_in), 1/sqrt(fan_in))."""
    k1, k2, k3, k4 = jax.random.split(key, 4)
    f_in = INPUT_SHAPE ** 2
    lim1 = 1.0 / jnp.sqrt(jnp.float32(f_in))
    lim2 = 1.0 / jnp.sqrt(jnp.float32(HIDDEN))
    w1 = jax.random.uniform(k1, (f_in, HIDDEN), jnp.float32, -lim1, lim1)
    b1 = jax.random.uniform(k2, (HIDDEN,), jnp.float32, -lim1, lim1)
    w2 = jax.random.uniform(k3, (HIDDEN, OUT), jnp.float32, -lim2, lim2)
    b2 = jax.random.uniform(k4, (OUT,), jnp.float32, -lim2, lim2)
    return w1, b1, w2, b2


if __name__ == "__main__":
    key = jax.random.PRNGKey(0)
    k_x, k_p = jax.random.split(key)

    # Input consistent with the module: (batch_size, input_shape, input_shape),
    # flattened inside the forward pass.
    x = jax.random.normal(k_x, (BATCH_SIZE, INPUT_SHAPE, INPUT_SHAPE), jnp.float32)
    w1, b1, w2, b2 = init_params(k_p)

    y = net_forward(x, w1, b1, w2, b2)
    y = jax.block_until_ready(y)

    # Reference checks in plain JAX (same math as the PyTorch module).
    x2d = x.reshape(BATCH_SIZE, -1)
    ref_f32 = jax.nn.sigmoid(jnp.maximum(x2d @ w1 + b1, 0.0) @ w2 + b2)
    # Exact-path reference for the bf16 MXU operands (f32 accumulation).
    h_bf = jnp.maximum(
        x2d.astype(jnp.bfloat16).astype(jnp.float32)
        @ w1.astype(jnp.bfloat16).astype(jnp.float32) + b1, 0.0)
    ref_bf = jax.nn.sigmoid(h_bf @ w2 + b2)

    assert y.shape == (BATCH_SIZE, 1)
    assert jnp.allclose(y, ref_bf, atol=1e-5, rtol=1e-5)   # matches the kernel's math
    assert jnp.allclose(y, ref_f32, atol=1e-2, rtol=1e-2)  # close to full-f32 module

    print("KERNEL_OK")
</pallas_src>

<mosaic_0001>
module attributes {stable_mosaic.version = 11 : i64} {
  func.func @_mlp_kernel(%arg0: i32, %arg1: memref<16x256xbf16, #tpu.memory_space<vmem>>, %arg2: memref<256x50xbf16, #tpu.memory_space<vmem>>, %arg3: memref<1x50xf32, #tpu.memory_space<vmem>>, %arg4: memref<1x50xf32, #tpu.memory_space<vmem>>, %arg5: memref<1x1xf32, #tpu.memory_space<vmem>>, %arg6: memref<16x128xf32, #tpu.memory_space<vmem>>) attributes {dimension_semantics = [#tpu.dimension_semantics<parallel>], iteration_bounds = array<i64: 1>, scalar_prefetch = 0 : i64, scratch_operands = 0 : i64, tpu.core_type = #tpu.core_type<tc>, window_params = [{transform_indices = @transform_0, window_bounds = array<i64: 16, 256>}, {pipeline_mode = #tpu.pipeline_mode<synchronous>, transform_indices = @transform_1, window_bounds = array<i64: 256, 50>}, {pipeline_mode = #tpu.pipeline_mode<synchronous>, transform_indices = @transform_2, window_bounds = array<i64: 1, 50>}, {pipeline_mode = #tpu.pipeline_mode<synchronous>, transform_indices = @transform_3, window_bounds = array<i64: 1, 50>}, {pipeline_mode = #tpu.pipeline_mode<synchronous>, transform_indices = @transform_4, window_bounds = array<i64: 1, 1>}, {transform_indices = @transform_5, window_bounds = array<i64: 16, 128>}]} {
    %c0 = arith.constant 0 : index
    %c0_0 = arith.constant 0 : index
    %0 = vector.load %arg1[%c0, %c0_0] : memref<16x256xbf16, #tpu.memory_space<vmem>>, vector<16x256xbf16>
    %c0_1 = arith.constant 0 : index
    %c0_2 = arith.constant 0 : index
    %1 = vector.load %arg2[%c0_1, %c0_2] : memref<256x50xbf16, #tpu.memory_space<vmem>>, vector<256x50xbf16>
    %cst = arith.constant dense<0.000000e+00> : vector<16x50xf32>
    %2 = tpu.matmul %0, %1, %cst {dimension_numbers = #tpu.dot_dimension_numbers<[1], [0], [0], [1], [0, 0, 1, 1], [], []>} : vector<16x256xbf16>, vector<256x50xbf16>, vector<16x50xf32> -> vector<16x50xf32>
    %c0_3 = arith.constant 0 : index
    %c0_4 = arith.constant 0 : index
    %3 = vector.load %arg3[%c0_3, %c0_4] : memref<1x50xf32, #tpu.memory_space<vmem>>, vector<1x50xf32>
    %4 = vector.broadcast %3 : vector<1x50xf32> to vector<16x50xf32>
    %5 = arith.addf %2, %4 : vector<16x50xf32>
    %cst_5 = arith.constant 0.000000e+00 : f32
    %6 = vector.broadcast %cst_5 : f32 to vector<16x50xf32>
    %7 = arith.maximumf %5, %6 : vector<16x50xf32>
    %c0_6 = arith.constant 0 : index
    %c0_7 = arith.constant 0 : index
    %8 = vector.load %arg4[%c0_6, %c0_7] : memref<1x50xf32, #tpu.memory_space<vmem>>, vector<1x50xf32>
    %9 = vector.broadcast %8 : vector<1x50xf32> to vector<16x50xf32>
    %10 = arith.mulf %7, %9 : vector<16x50xf32>
    %cst_8 = arith.constant dense<0.000000e+00> : vector<16xf32>
    %11 = vector.multi_reduction <add>, %10, %cst_8 [1] : vector<16x50xf32> to vector<16xf32>
    %12 = vector.shape_cast %11 : vector<16xf32> to vector<16x1xf32>
    %c0_9 = arith.constant 0 : index
    %c0_10 = arith.constant 0 : index
    %13 = vector.load %arg5[%c0_9, %c0_10] : memref<1x1xf32, #tpu.memory_space<vmem>>, vector<1x1xf32>
    %14 = vector.broadcast %13 : vector<1x1xf32> to vector<16x1xf32>
    %15 = arith.addf %12, %14 : vector<16x1xf32>
    %16 = arith.negf %15 : vector<16x1xf32>
    %17 = math.exp %16 : vector<16x1xf32>
    %cst_11 = arith.constant 1.000000e+00 : f32
    %18 = vector.broadcast %cst_11 : f32 to vector<16x1xf32>
    %19 = arith.addf %18, %17 : vector<16x1xf32>
    %20 = arith.divf %18, %19 : vector<16x1xf32>
    %21 = vector.shape_cast %20 : vector<16x1xf32> to vector<16x1xf32>
    %22 = vector.broadcast %21 : vector<16x1xf32> to vector<16x128xf32>
    %c0_12 = arith.constant 0 : index
    %c0_13 = arith.constant 0 : index
    %23 = vector.load %arg6[%c0_12, %c0_13] : memref<16x128xf32, #tpu.memory_space<vmem>>, vector<16x128xf32>
    tpu.vector_store %arg6[%c0_12, %c0_13], %22 {strides = array<i32>} : memref<16x128xf32, #tpu.memory_space<vmem>>, vector<16x128xf32>,
    return
  }
  func.func @transform_0(%arg0: i32) -> (i32, i32) {
    %c0_i32 = arith.constant 0 : i32
    %c0_i32_0 = arith.constant 0 : i32
    return %arg0, %c0_i32 : i32, i32
  }
  func.func @transform_1(%arg0: i32) -> (i32, i32) {
    %c0_i32 = arith.constant 0 : i32
    %c0_i32_0 = arith.constant 0 : i32
    %c0_i32_1 = arith.constant 0 : i32
    return %c0_i32, %c0_i32_0 : i32, i32
  }
  func.func @transform_2(%arg0: i32) -> (i32, i32) {
    %c0_i32 = arith.constant 0 : i32
    %c0_i32_0 = arith.constant 0 : i32
    %c0_i32_1 = arith.constant 0 : i32
    return %c0_i32, %c0_i32_0 : i32, i32
  }
  func.func @transform_3(%arg0: i32) -> (i32, i32) {
    %c0_i32 = arith.constant 0 : i32
    %c0_i32_0 = arith.constant 0 : i32
    %c0_i32_1 = arith.constant 0 : i32
    return %c0_i32, %c0_i32_0 : i32, i32
  }
  func.func @transform_4(%arg0: i32) -> (i32, i32) {
    %c0_i32 = arith.constant 0 : i32
    %c0_i32_0 = arith.constant 0 : i32
    %c0_i32_1 = arith.constant 0 : i32
    return %c0_i32, %c0_i32_0 : i32, i32
  }
  func.func @transform_5(%arg0: i32) -> (i32, i32) {
    %c0_i32 = arith.constant 0 : i32
    %c0_i32_0 = arith.constant 0 : i32
    return %arg0, %c0_i32 : i32, i32
  }
}

</mosaic_0001>

<bundles_post_ra>
// kernel: tpu_custom_call.1
= control target key start
LH: loop header
LB: loop body
LE: loop exit
PB: predicated region body
PF: predicated region fallthrough
CT: control target
= control target key end

     0   :  { %s479_s0 = inlined_call_operand.vmem [shape: bf16[16,256], index: 0, kind: input, shape index: {}]   ;;  %s480_s1 = inlined_call_operand.vmem [shape: bf16[256,50], index: 1, kind: input, shape index: {}]   ;;  %s481_s2 = inlined_call_operand.vmem [shape: f32[1,50], index: 2, kind: input, shape index: {}]   ;;  %s482_s3 = inlined_call_operand.vmem [shape: f32[1,50], index: 3, kind: input, shape index: {}]   ;;  %s483_s4 = inlined_call_operand.<no memory space> [shape: f32[1,1], index: 4, kind: input, shape index: {}]   ;;  %s484_s5 = inlined_call_operand.hbm [shape: f32[16,128], index: 5, kind: output, shape index: {}]  }
   0x1   :  { %v10_v0 = vstv %s483_s4 }
   0x2   :  { %11 = vst [vmem:[#allocation2] sm:$0x1] %v10_v0 }
   0x3   :  { %v330_v1 = vld [vmem:[%s480_s1 + $0x78] sm:$0xff]   ;;  %v332_v3 = vld [vmem:[%s480_s1 + $0x70] sm:$0xff]   ;;  %v334_v5 = vld [vmem:[%s480_s1 + $0x68] sm:$0xff]  }
   0x4   :  { %v331_v2 = vld [vmem:[%s480_s1 + $0x38] sm:$0xff]   ;;  %302 = vmatprep.subr.bf16.mxu0 %v330_v1  ;;  %v333_v4 = vld [vmem:[%s480_s1 + $0x30] sm:$0xff]   ;;  %v335_v6 = vld [vmem:[%s480_s1 + $0x28] sm:$0xff]  }
   0x5   :  { %303 = vmatpush3.bf16.msra.mxu0 %v331_v2  ;;  %v336_v7 = vld [vmem:[%s480_s1 + $0x60] sm:$0xff]   ;;  %v338_v9 = vld [vmem:[%s480_s1 + $0x58] sm:$0xff]   ;;  %v340_v11 = vld [vmem:[%s480_s1 + $0x50] sm:$0xff]  }
   0x6   :  { %304 = vmatprep.subr.bf16.mxu0 %v332_v3  ;;  %v337_v8 = vld [vmem:[%s480_s1 + $0x20] sm:$0xff]   ;;  %v339_v10 = vld [vmem:[%s480_s1 + $0x18] sm:$0xff]  }
   0x7   :  { %v348_v12 = vld [vmem:[%s479_s0 + $0x4] ss:$8 sps:$4 sm:$0xff]  }
   0x9   :  { %305 = vmatpush3.bf16.msra.mxu0 %v333_v4 }
   0xa   :  { %306 = vmatprep.subr.bf16.mxu0 %v334_v5 }
   0xd   :  { %307 = vmatpush3.bf16.msra.mxu0 %v335_v6 }
   0xe   :  { %308 = vmatprep.subr.bf16.mxu0 %v336_v7 }
  0x11   :  { %309 = vmatpush3.bf16.msra.mxu0 %v337_v8 }
  0x12   :  { %310 = vmatprep.subr.bf16.mxu0 %v338_v9 }
  0x13   :  { %12 = vsyncpa [#allocation4], 0  ;;  %v341_v13 = vld [vmem:[%s480_s1 + $0x10] sm:$0xff]   ;;  %203 = vmatprep.mubr.bf16.mxu0 %v348_v12  ;;  %v342_v14 = vld [vmem:[%s480_s1 + $0x48] sm:$0xff]   ;;  %vm223_vm0 = vcmask 408576   ;;  %v379_v35 = vmov 0  }
  0x14   :  { %v343_v15 = vld [vmem:[%s480_s1 + $0x8] sm:$0xff]   ;;  %v344_v16 = vld [vmem:[%s480_s1 + $0x40] sm:$0xff]   ;;  %328 = vset.pattern.permute.xlu1 %v379_v35  ;;  %329 = vset.pattern.permute.xlu0 %v379_v35 }
  0x15   :  { %311 = vmatpush3.bf16.msra.mxu0 %v339_v10  ;;  %v345_v17 = vld [vmem:[%s480_s1] sm:$0xff]  }
  0x16   :  { %312 = vmatprep.subr.bf16.mxu0 %v340_v11  ;;  %v346_v18 = vld [vmem:[%s479_s0] ss:$8 sps:$4 sm:$0xff]   ;;  %s380_s0 = smov [#allocation3]  }
  0x17   :  { %v279_v20 = vld [vmem:[%s481_s2] ss:$0 sm:$0xff]  ;;  %s268_s1 = sshll.u32 %s380_s0, 4  ;;  %s269_s1 = int_to_ptr.vmem [resolvable:$true] %s268_s1 }
  0x18   :  { %v298_v26 = vld [vmem:[%s482_s3] ss:$0 sm:$0xff]  ;;  %s357_s2 = scalar_lea.vmem %s269_s1, 256  ;;  %p362_p1 = scmp.lt.s32.totalorder %s269_s1, %s269_s1 }
  0x19   :  { %313 = vmatpush3.bf16.msra.mxu0 %v341_v13  ;;  %v299_v36 = vld [vmem:[#allocation2] ss:$0 sm:$0xff]  ;;  %p358_p0 = scmp.ne.s32.totalorder %s269_s1, %s357_s2  ;;  %p363_p2 = scmp.lt.s32.totalorder %s357_s2, %s357_s2 }
  0x1a   :  { %314 = vmatprep.subr.bf16.mxu0 %v342_v14 }
  0x1b   :  { %p364_p3 = por %p363_p2, %p362_p1 }
  0x1d   :  { %315 = vmatpush3.bf16.msra.mxu0 %v343_v15  ;;  %p365_p4 = pnand %p364_p3, %p358_p0 }
  0x1e   :  { %316 = vmatprep.subr.bf16.mxu0 %v344_v16 }
  0x21   :  { %317 = vmatpush3.bf16.msra.mxu0 %v345_v17 }
  0x24   :  { %204 = vmatmul.mubr.bf16.vlgmr.msra.gmra.mxu0 %v346_v18 }
  0xe4   :  { %v318_v19 = vpop.f32.mrf.mxu0 }
  0xe6   :  { %v319_v21 = vpop.f32.mrf.mxu0 }
  0xe7   :  { %v320_v22 = vadd.f32 %v319_v21, %v318_v19 }
  0xe8   :  { %v321_v23 = vpop.f32.mrf.mxu0 }
  0xe9   :  { %v206_v24 = vadd.f32 %v320_v22, %v279_v20 }
  0xea   :  { %v322_v25 = vpop.f32.mrf.mxu0 }
  0xeb   :  { %v212_v27 = vmax.f32 %v206_v24, 0.0  ;;  %v323_v28 = vadd.f32 %v322_v25, %v321_v23 }
  0xed   :  { %v209_v29 = vadd.f32 %v323_v28, %v279_v20  ;;  %v221_v30 = vmul.f32 %v298_v26, %v212_v27 }
  0xef   :  { %v213_v31 = vmax.f32 %v209_v29, 0.0  ;;  %v224_v32 = vsel %vm223_vm0, %v221_v30, 0.0 }
  0xf0   :  { %225 = vadd.xlane.f32.xlu0 %v224_v32 }
  0xf1   :  { %v222_v33 = vmul.f32 %v298_v26, %v213_v31 }
  0xf3   :  { %v227_v34 = vsel %vm223_vm0, %v222_v33, 0.0 }
  0xf4   :  { %228 = vadd.xlane.f32.xlu0 %v227_v34 }
 0x179   :  { %v226_v37 = vpop.xlane.xlu0 %225 }
 0x17a   :  { %v237_v38 = vadd.f32 %v299_v36, %v226_v37 }
 0x17c   :  { %v300_v39 = vmul.f32 -1.442695, %v237_v38 }
 0x17d   :  { %v229_v40 = vpop.xlane.xlu0 %228 }
 0x17e   :  { %349 = vpow2.f32 %v300_v39  ;;  %v238_v41 = vadd.f32 %v299_v36, %v229_v40 }
 0x180   :  { %v301_v42 = vmul.f32 -1.442695, %v238_v41 }
 0x182   :  { %351 = vpow2.f32 %v301_v42 }
 0x18b   :  { %v350_v43 = vpop.eup %349 }
 0x18c   :  { %v245_v44 = vadd.f32 1.0, %v350_v43 }
 0x18e   :  { %353 = vrcp.f32 %v245_v44 }
 0x18f   :  { %v352_v45 = vpop.eup %351 }
 0x190   :  { %v246_v46 = vadd.f32 1.0, %v352_v45 }
 0x192   :  { %355 = vrcp.f32 %v246_v46 }
 0x19b   :  { %v354_v47 = vpop.eup %353 }
 0x19c   :  { %253 = vperm.xlu1 %328, %v354_v47  }
 0x19f   :  { %v356_v48 = vpop.eup %355 }
 0x1a0   :  { %258 = vperm.xlu1 %328, %v356_v48  }
 0x217   :  { %v254_v49 = vpop.permute.xlu1 %253 }
 0x218   :  { %261 = vst [vmem:[#allocation3] sm:$0xff] %v254_v49 }
 0x21b   :  { %v259_v50 = vpop.permute.xlu1 %258 }
 0x21c   :  { %262 = vst [vmem:[#allocation3 + $0x8] sm:$0xff] %v259_v50 }
 0x21d   :  { %368 = shalt.err (!%p365_p4)
}
 0x21e   :  { %s381_s3 = smov 128   ;;  %s382_s8 = smov 8  }
 0x21f   :  { %274 = dma.vmem_to_hbm [thread:$0]  %s269_s1, 256, %s484_s5, [#allocation4], %s381_s3, %s381_s3, %s382_s8  }
 0x220   :  { %377 = dma.done.wait [#allocation4], 256  }
 0x221   :  { %378 = vsyncadd [#allocation4], 4294967040 }
 0x222   :  { %278 = vsyncpa [#allocation4], 1 }

</bundles_post_ra>
